<compile_context>
chip_gen: v6e
topology: v6e:2x2x1
jax: 0.10.0
libtpu: 0.0.40
codegen_flags: <defaults>
</compile_context>

<pallas_src>
import functools

import jax
import jax.numpy as jnp
from jax.experimental import pallas as pl
from jax.experimental.pallas import tpu as pltpu

EPS = 1e-5


def _round_up(v, m):
    return -(-v // m) * m


def _num_tensorcores():
    """Best-effort TensorCores-per-device (2 on v7x-style parts, else 1)."""
    try:
        info = pltpu.get_tpu_info()
        for attr in ("tensorcore_count", "num_tensorcores", "tensorcores_per_chip"):
            v = getattr(info, attr, None)
            if isinstance(v, int) and v > 0:
                return min(v, 2)
    except Exception:
        pass
    try:
        if "7" in jax.devices()[0].device_kind.lower():
            return 2
    except Exception:
        pass
    return 1


def _resblock_kernel(x_ref, w_ref, b_ref, o_ref, *, true_w, n_pad, compute_dtype):
    """Fused: y = scaling(centering(relu(x @ W^T + b)) + x) for one row tile.

    x_ref : (bm, Wp)  input tile (original dtype)
    w_ref : (Wp, Wp)  fc1 weight, pre-transposed to (in, out), pre-cast, resident
    b_ref : (1,  Wp)  fc1 bias (f32), resident
    o_ref : (bm, Wp)  output tile
    """
    inv_w = jnp.float32(1.0 / true_w)

    # Row mean of x — padded lanes are zero, so sum/true_w is exact.  Issued
    # early so the XLU reduction overlaps the MXU matmul.
    mu = jnp.sum(x_ref[...].astype(jnp.float32), axis=-1, keepdims=True) * inv_w

    # fc1 on the MXU: weight is already (in, out) so this is a plain
    # contraction (no per-step transpose), operands in compute_dtype (bf16 by
    # default) with an f32 accumulate.
    h = jnp.dot(x_ref[...].astype(compute_dtype), w_ref[...],
                preferred_element_type=jnp.float32)
    h = jnp.maximum(h + b_ref[...], 0.0)

    # LayerNormCentering (no affine).  Padded h lanes are exactly zero (zero
    # padded x lanes, zero padded weight rows/cols, zero padded bias).
    mean_h = jnp.sum(h, axis=-1, keepdims=True) * inv_w

    # Dropout(p=0) == identity.  Residual add re-reads x from VMEM instead of
    # holding it live across the matmul (caps vreg pressure on large tiles).
    z = h - mean_h + x_ref[...].astype(jnp.float32)

    # LayerNormScaling (no affine).  mean(z) over the true lanes == mean(x)
    # == mu (centering zeroed mean(h)), so var = E[z^2] - mu^2.  Padded lanes
    # of z are all exactly -mean_h, so instead of a full-tile iota/where mask
    # we apply a scalar per-row correction to sum(z^2).
    sum_z2 = jnp.sum(z * z, axis=-1, keepdims=True)
    if n_pad:
        sum_z2 = sum_z2 - jnp.float32(n_pad) * (mean_h * mean_h)
    var = sum_z2 * inv_w - mu * mu

    # Padded output lanes hold garbage (-mean_h scaled); wrapper slices [:B,:W].
    o_ref[...] = (z * jax.lax.rsqrt(var + EPS)).astype(o_ref.dtype)


def make_resblock_dropout(weight, bias, *, block_rows=None,
                          compute_dtype=jnp.bfloat16):
    """One-time parameter prep + jitted forward for ResBlockDropout.

    weight: (W, W) PyTorch Linear layout (out, in); bias: (W,).
    Returns forward(x) with x of shape (B, W).
    """
    W = weight.shape[0]
    assert weight.shape == (W, W) and bias.shape == (W,)

    W_pad = max(128, _round_up(W, 128))
    n_pad = W_pad - W

    # ---- one-time parameter prep (eager, hoisted out of the call path) -----
    w_t = jnp.pad(weight, ((0, n_pad), (0, n_pad))).T          # (in, out) layout
    w_t = jax.block_until_ready(jnp.asarray(w_t, dtype=compute_dtype))
    b_p = jnp.pad(bias, (0, n_pad)).astype(jnp.float32).reshape(1, W_pad)
    b_p = jax.block_until_ready(b_p)

    ntc = _num_tensorcores()
    w_item = jnp.dtype(compute_dtype).itemsize
    # Grid-invariant operands gain nothing from double buffering; only request
    # single-buffering when the resident weight is actually large (keeps the
    # small-width default path on the well-trodden default pipeline).
    single_buffer_resident = W_pad >= 1024

    kernel = functools.partial(_resblock_kernel, true_w=W, n_pad=n_pad,
                               compute_dtype=compute_dtype)

    @jax.jit
    def forward(x):
        B, Wx = x.shape
        assert Wx == W
        itemsize = jnp.dtype(x.dtype).itemsize
        sublane = max(8, 32 // max(itemsize, 1))   # 8 f32 / 16 bf16 / 32 int8

        # ---- row-tile heuristic ----
        if block_rows is None:
            cap = 1024 if W_pad <= 512 else 512
            if B <= cap and ntc <= 1:
                bm = B                     # single grid step on 1-TC chips
            elif B <= cap * ntc:
                bm = -(-B // ntc)          # one step per TensorCore
            else:
                bm = cap
        else:
            bm = block_rows
        bm = _round_up(max(bm, 1), sublane)
        bm = min(bm, _round_up(B, sublane))

        B_pad = _round_up(B, bm)
        x_p = x
        if B_pad != B or n_pad:
            x_p = jnp.pad(x, ((0, B_pad - B), (0, n_pad)))
        grid = (B_pad // bm,)

        resident_kwargs = (
            {"pipeline_mode": pl.Buffered(1)} if single_buffer_resident else {})
        w_bufs = 1 if single_buffer_resident else 2
        vmem_need = (W_pad * W_pad * w_item * w_bufs        # resident weight
                     + 2 * bm * W_pad * itemsize * 2        # x + out, double-buffered
                     + 2 * W_pad * 4                        # bias
                     + (4 << 20))                           # spill / scratch slack
        vmem_limit = max(16 << 20, min(int(vmem_need), 64 << 20))

        out = pl.pallas_call(
            kernel,
            out_shape=jax.ShapeDtypeStruct((B_pad, W_pad), x.dtype),
            grid=grid,
            in_specs=[
                pl.BlockSpec((bm, W_pad), lambda i: (i, 0)),                # x tile
                pl.BlockSpec((W_pad, W_pad), lambda i: (0, 0), **resident_kwargs),
                pl.BlockSpec((1, W_pad), lambda i: (0, 0), **resident_kwargs),
            ],
            out_specs=pl.BlockSpec((bm, W_pad), lambda i: (i, 0)),
            compiler_params=pltpu.CompilerParams(
                dimension_semantics=("parallel",),
                vmem_limit_bytes=vmem_limit),
            cost_estimate=pl.CostEstimate(
                flops=2 * B_pad * W_pad * W_pad,
                transcendentals=B_pad,
                bytes_accessed=(2 * B_pad * W_pad * itemsize
                                + W_pad * W_pad * w_item + W_pad * 4)),
        )(x_p, w_t, b_p)

        if B_pad != B or n_pad:
            out = out[:B, :W]
        return out

    return forward


def _reference(x, weight, bias, x_mm=None, w_mm=None):
    xm = x if x_mm is None else x_mm
    wm = weight if w_mm is None else w_mm
    h = jnp.maximum(xm @ wm.T + bias, 0.0)
    h = h - jnp.mean(h, axis=-1, keepdims=True)    # LayerNormCentering (no affine)
    z = h + x                                      # Dropout(p=0) + residual
    var = jnp.var(z, axis=-1, keepdims=True)       # biased, matches LayerNorm
    return z / jnp.sqrt(var + EPS)                 # LayerNormScaling (no affine)


if __name__ == "__main__":
    width = 100     # module default (padded to 128 lanes inside the wrapper)
    batch = 32

    key = jax.random.PRNGKey(0)
    kx, kw, kb = jax.random.split(key, 3)

    # Deterministic PyTorch-Linear-style init: U(-1/sqrt(width), 1/sqrt(width))
    bound = 1.0 / (width ** 0.5)
    weight = jax.random.uniform(kw, (width, width), jnp.float32, -bound, bound)
    bias = jax.random.uniform(kb, (width,), jnp.float32, -bound, bound)
    x = jax.random.normal(kx, (batch, width), jnp.float32)

    forward = make_resblock_dropout(weight, bias)   # one-time param prep + jit
    out = jax.block_until_ready(forward(x))
    assert out.shape == (batch, width)

    # Tight check vs a reference using the same operand rounding as the
    # kernel's MXU matmul (bf16 products accumulate exactly in f32).
    xq = x.astype(jnp.bfloat16).astype(jnp.float32)
    wq = weight.astype(jnp.bfloat16).astype(jnp.float32)
    ref_q = _reference(x, weight, bias, x_mm=xq, w_mm=wq)
    assert jnp.allclose(out, ref_q, atol=1e-4, rtol=1e-4), "kernel mismatch"

    # Loose check vs pure-f32 module semantics (bounds the bf16 matmul drift).
    ref_f32 = _reference(x, weight, bias)
    assert jnp.allclose(out, ref_f32, atol=3e-2, rtol=0.0), "bf16 drift too large"

    print("KERNEL_OK")
</pallas_src>

<mosaic_0001>
module attributes {stable_mosaic.version = 11 : i64} {
  func.func @_resblock_kernel(%arg0: i32, %arg1: memref<32x128xf32, #tpu.memory_space<vmem>>, %arg2: memref<128x128xbf16, #tpu.memory_space<vmem>>, %arg3: memref<1x128xf32, #tpu.memory_space<vmem>>, %arg4: memref<32x128xf32, #tpu.memory_space<vmem>>) attributes {dimension_semantics = [#tpu.dimension_semantics<parallel>], iteration_bounds = array<i64: 1>, scalar_prefetch = 0 : i64, scratch_operands = 0 : i64, tpu.core_type = #tpu.core_type<tc>, window_params = [{transform_indices = @transform_0, window_bounds = array<i64: 32, 128>}, {pipeline_mode = #tpu.pipeline_mode<synchronous>, transform_indices = @transform_1, window_bounds = array<i64: 128, 128>}, {pipeline_mode = #tpu.pipeline_mode<synchronous>, transform_indices = @transform_2, window_bounds = array<i64: 1, 128>}, {transform_indices = @transform_3, window_bounds = array<i64: 32, 128>}]} {
    %c0 = arith.constant 0 : index
    %c0_0 = arith.constant 0 : index
    %0 = vector.load %arg1[%c0, %c0_0] : memref<32x128xf32, #tpu.memory_space<vmem>>, vector<32x128xf32>
    %cst = arith.constant dense<0.000000e+00> : vector<32xf32>
    %1 = vector.multi_reduction <add>, %0, %cst [1] : vector<32x128xf32> to vector<32xf32>
    %2 = vector.shape_cast %1 : vector<32xf32> to vector<32x1xf32>
    %cst_1 = arith.constant 0.00999999977 : f32
    %3 = vector.broadcast %cst_1 : f32 to vector<32x1xf32>
    %4 = arith.mulf %2, %3 : vector<32x1xf32>
    %c0_2 = arith.constant 0 : index
    %c0_3 = arith.constant 0 : index
    %5 = vector.load %arg1[%c0_2, %c0_3] : memref<32x128xf32, #tpu.memory_space<vmem>>, vector<32x128xf32>
    %6 = arith.truncf %5 : vector<32x128xf32> to vector<32x128xbf16>
    %c0_4 = arith.constant 0 : index
    %c0_5 = arith.constant 0 : index
    %7 = vector.load %arg2[%c0_4, %c0_5] : memref<128x128xbf16, #tpu.memory_space<vmem>>, vector<128x128xbf16>
    %cst_6 = arith.constant dense<0.000000e+00> : vector<32x128xf32>
    %8 = tpu.matmul %6, %7, %cst_6 {dimension_numbers = #tpu.dot_dimension_numbers<[1], [0], [0], [1], [0, 0, 1, 1], [], []>} : vector<32x128xbf16>, vector<128x128xbf16>, vector<32x128xf32> -> vector<32x128xf32>
    %c0_7 = arith.constant 0 : index
    %c0_8 = arith.constant 0 : index
    %9 = vector.load %arg3[%c0_7, %c0_8] : memref<1x128xf32, #tpu.memory_space<vmem>>, vector<1x128xf32>
    %10 = vector.broadcast %9 : vector<1x128xf32> to vector<32x128xf32>
    %11 = arith.addf %8, %10 : vector<32x128xf32>
    %cst_9 = arith.constant 0.000000e+00 : f32
    %12 = vector.broadcast %cst_9 : f32 to vector<32x128xf32>
    %13 = arith.maximumf %11, %12 : vector<32x128xf32>
    %cst_10 = arith.constant dense<0.000000e+00> : vector<32xf32>
    %14 = vector.multi_reduction <add>, %13, %cst_10 [1] : vector<32x128xf32> to vector<32xf32>
    %15 = vector.shape_cast %14 : vector<32xf32> to vector<32x1xf32>
    %cst_11 = arith.constant 0.00999999977 : f32
    %16 = vector.broadcast %cst_11 : f32 to vector<32x1xf32>
    %17 = arith.mulf %15, %16 : vector<32x1xf32>
    %18 = vector.broadcast %17 : vector<32x1xf32> to vector<32x128xf32>
    %19 = arith.subf %13, %18 : vector<32x128xf32>
    %c0_12 = arith.constant 0 : index
    %c0_13 = arith.constant 0 : index
    %20 = vector.load %arg1[%c0_12, %c0_13] : memref<32x128xf32, #tpu.memory_space<vmem>>, vector<32x128xf32>
    %21 = arith.addf %19, %20 : vector<32x128xf32>
    %22 = arith.mulf %21, %21 : vector<32x128xf32>
    %cst_14 = arith.constant dense<0.000000e+00> : vector<32xf32>
    %23 = vector.multi_reduction <add>, %22, %cst_14 [1] : vector<32x128xf32> to vector<32xf32>
    %24 = vector.shape_cast %23 : vector<32xf32> to vector<32x1xf32>
    %25 = arith.mulf %17, %17 : vector<32x1xf32>
    %cst_15 = arith.constant 2.800000e+01 : f32
    %26 = vector.broadcast %cst_15 : f32 to vector<32x1xf32>
    %27 = arith.mulf %26, %25 : vector<32x1xf32>
    %28 = arith.subf %24, %27 : vector<32x1xf32>
    %cst_16 = arith.constant 0.00999999977 : f32
    %29 = vector.broadcast %cst_16 : f32 to vector<32x1xf32>
    %30 = arith.mulf %28, %29 : vector<32x1xf32>
    %31 = arith.mulf %4, %4 : vector<32x1xf32>
    %32 = arith.subf %30, %31 : vector<32x1xf32>
    %cst_17 = arith.constant 9.99999974E-6 : f32
    %33 = vector.broadcast %cst_17 : f32 to vector<32x1xf32>
    %34 = arith.addf %32, %33 : vector<32x1xf32>
    %35 = math.rsqrt %34 : vector<32x1xf32>
    %36 = vector.broadcast %35 : vector<32x1xf32> to vector<32x128xf32>
    %37 = arith.mulf %21, %36 : vector<32x128xf32>
    %c0_18 = arith.constant 0 : index
    %c0_19 = arith.constant 0 : index
    %38 = vector.load %arg4[%c0_18, %c0_19] : memref<32x128xf32, #tpu.memory_space<vmem>>, vector<32x128xf32>
    tpu.vector_store %arg4[%c0_18, %c0_19], %37 {strides = array<i32>} : memref<32x128xf32, #tpu.memory_space<vmem>>, vector<32x128xf32>,
    return
  }
  func.func @transform_0(%arg0: i32) -> (i32, i32) {
    %c0_i32 = arith.constant 0 : i32
    %c0_i32_0 = arith.constant 0 : i32
    return %arg0, %c0_i32 : i32, i32
  }
  func.func @transform_1(%arg0: i32) -> (i32, i32) {
    %c0_i32 = arith.constant 0 : i32
    %c0_i32_0 = arith.constant 0 : i32
    %c0_i32_1 = arith.constant 0 : i32
    return %c0_i32, %c0_i32_0 : i32, i32
  }
  func.func @transform_2(%arg0: i32) -> (i32, i32) {
    %c0_i32 = arith.constant 0 : i32
    %c0_i32_0 = arith.constant 0 : i32
    %c0_i32_1 = arith.constant 0 : i32
    return %c0_i32, %c0_i32_0 : i32, i32
  }
  func.func @transform_3(%arg0: i32) -> (i32, i32) {
    %c0_i32 = arith.constant 0 : i32
    %c0_i32_0 = arith.constant 0 : i32
    return %arg0, %c0_i32 : i32, i32
  }
}

</mosaic_0001>

<bundles_post_ra>
// kernel: forward.1
= control target key start
LH: loop header
LB: loop body
LE: loop exit
PB: predicated region body
PF: predicated region fallthrough
CT: control target
= control target key end

     0   :  { %s391_s0 = inlined_call_operand.vmem [shape: f32[32,128], index: 0, kind: input, shape index: {}]   ;;  %s392_s1 = inlined_call_operand.vmem [shape: bf16[128,128], index: 1, kind: input, shape index: {}]   ;;  %s393_s2 = inlined_call_operand.vmem [shape: f32[1,128], index: 2, kind: input, shape index: {}]   ;;  %s394_s3 = inlined_call_operand.hbm [shape: f32[32,128], index: 3, kind: output, shape index: {}]  }
   0x1   :  { %v288_v0 = vld [vmem:[%s392_s1 + $0x38] sm:$0xff]   ;;  %v289_v1 = vld [vmem:[%s392_s1 + $0x30] sm:$0xff]   ;;  %v290_v2 = vld [vmem:[%s392_s1 + $0x28] sm:$0xff]  }
   0x2   :  { %265 = vmatprep.subr.bf16.mxu0 %v288_v0  ;;  %v291_v3 = vld [vmem:[%s392_s1 + $0x20] sm:$0xff]   ;;  %v17_v5 = vld [vmem:[%s391_s0 + $0x8] sm:$0xff] }
   0x3   :  { %266 = vmatpush3.bf16.msra.mxu0 %v288_v0  ;;  %v16_v4 = vld [vmem:[%s391_s0] sm:$0xff] }
   0x4   :  { %267 = vmatprep.subr.bf16.mxu0 %v289_v1  ;;  %v32_v6 = vpack.c.bf16 %v17_v5, %v16_v4 }
   0x7   :  { %268 = vmatpush3.bf16.msra.mxu0 %v289_v1 }
   0x8   :  { %269 = vmatprep.subr.bf16.mxu0 %v290_v2 }
   0x9   :  { %8 = vsyncpa [#allocation3], 0  ;;  %281 = vmatprep.mubr.bf16.mxu0 %v32_v6  ;;  %v292_v7 = vld [vmem:[%s392_s1 + $0x18] sm:$0xff]   ;;  %v293_v8 = vld [vmem:[%s392_s1 + $0x10] sm:$0xff]  }
   0xa   :  { %v294_v9 = vld [vmem:[%s392_s1 + $0x8] sm:$0xff]   ;;  %v295_v10 = vld [vmem:[%s392_s1] sm:$0xff]   ;;  %v18_v11 = vld [vmem:[%s391_s0 + $0x10] sm:$0xff] }
   0xb   :  { %270 = vmatpush3.bf16.msra.mxu0 %v290_v2  ;;  %v19_v12 = vld [vmem:[%s391_s0 + $0x18] sm:$0xff]  ;;  %v246_v14 = vld [vmem:[%s393_s2] ss:$0 sm:$0xff]  ;;  %s326_s0 = smov [#allocation2]  }
   0xc   :  { %271 = vmatprep.subr.bf16.mxu0 %v291_v3  ;;  %v33_v13 = vpack.c.bf16 %v19_v12, %v18_v11  ;;  %s235_s1 = sshll.u32 %s326_s0, 4  ;;  %s236_s1 = int_to_ptr.vmem [resolvable:$true] %s235_s1 }
   0xd   :  { %s304_s2 = scalar_lea.vmem %s236_s1, 512  ;;  %p309_p1 = scmp.lt.s32.totalorder %s236_s1, %s236_s1 }
   0xe   :  { %p305_p0 = scmp.ne.s32.totalorder %s236_s1, %s304_s2  ;;  %p310_p2 = scmp.lt.s32.totalorder %s304_s2, %s304_s2 }
   0xf   :  { %272 = vmatpush3.bf16.msra.mxu0 %v291_v3 }
  0x10   :  { %273 = vmatprep.subr.bf16.mxu0 %v292_v7  ;;  %p311_p3 = por %p310_p2, %p309_p1 }
  0x12   :  { %p312_p4 = pnand %p311_p3, %p305_p0 }
  0x13   :  { %274 = vmatpush3.bf16.msra.mxu0 %v292_v7 }
  0x14   :  { %275 = vmatprep.subr.bf16.mxu0 %v293_v8 }
  0x17   :  { %276 = vmatpush3.bf16.msra.mxu0 %v293_v8 }
  0x18   :  { %277 = vmatprep.subr.bf16.mxu0 %v294_v9 }
  0x1b   :  { %278 = vmatpush3.bf16.msra.mxu0 %v294_v9 }
  0x1c   :  { %279 = vmatprep.subr.bf16.mxu0 %v295_v10 }
  0x1f   :  { %280 = vmatpush3.bf16.msra.mxu0 %v295_v10 }
  0x22   :  { %282 = vmatmul.mubr.bf16.vlgmr.msra.gmra.mxu0 %v33_v13 }
  0xe2   :  { %v283_v15 = vpop.f32.mrf.mxu0 }
  0xe3   :  { %v148_v16 = vadd.f32 %v283_v15, %v246_v14 }
  0xe4   :  { %v139_v17 = vpop.f32.mrf.mxu0 }
  0xe5   :  { %v156_v18 = vmax.f32 %v148_v16, 0.0  ;;  %v140_v19 = vadd.f32 %v246_v14, %v139_v17 }
  0xe6   :  { %v284_v20 = vpop.f32.mrf.mxu0 }
  0xe7   :  { %v154_v21 = vmax.f32 %v140_v19, 0.0  ;;  %v151_v22 = vadd.f32 %v284_v20, %v246_v14  ;;  %162 = vadd.xlane.f32.xlu1 %v156_v18 }
  0xe8   :  { %v142_v23 = vpop.f32.mrf.mxu0 }
  0xe9   :  { %v157_v24 = vmax.f32 %v151_v22, 0.0  ;;  %v143_v25 = vadd.f32 %v246_v14, %v142_v23  ;;  %158 = vadd.xlane.f32.xlu0 %v154_v21 }
  0xeb   :  { %v155_v26 = vmax.f32 %v143_v25, 0.0  ;;  %164 = vadd.xlane.f32.xlu1 %v157_v24 }
  0xed   :  { %160 = vadd.xlane.f32.xlu0 %v155_v26 }
  0xef   :  { %22 = vadd.xlane.f32.xlu1 %v17_v5 }
  0xf1   :  { %20 = vadd.xlane.f32.xlu0 %v16_v4 }
  0xf3   :  { %26 = vadd.xlane.f32.xlu1 %v19_v12 }
  0xf5   :  { %24 = vadd.xlane.f32.xlu0 %v18_v11 }
 0x170   :  { %v163_v27 = vpop.xlane.xlu1 %162 }
 0x171   :  { %v168_v28 = vmul.f32 0.01, %v163_v27 }
 0x172   :  { %v159_v29 = vpop.xlane.xlu0 %158 }
 0x173   :  { %v166_v30 = vmul.f32 0.01, %v159_v29  ;;  %v172_v32 = vsub.f32 %v156_v18, %v168_v28  ;;  %v192_v51 = vmul.f32 %v168_v28, %v168_v28 }
 0x174   :  { %v165_v31 = vpop.xlane.xlu1 %164 }
 0x175   :  { %v170_v33 = vsub.f32 %v154_v21, %v166_v30  ;;  %v169_v34 = vmul.f32 0.01, %v165_v31  ;;  %v176_v41 = vadd.f32 %v172_v32, %v18_v11  ;;  %v190_v50 = vmul.f32 %v166_v30, %v166_v30 }
 0x176   :  { %v161_v35 = vpop.xlane.xlu0 %160  ;;  %v196_v60 = vmul.f32 28.0, %v192_v51 }
 0x177   :  { %v167_v36 = vmul.f32 0.01, %v161_v35  ;;  %v174_v37 = vadd.f32 %v170_v33, %v16_v4  ;;  %v173_v38 = vsub.f32 %v157_v24, %v169_v34  ;;  %v180_v43 = vmul.f32 %v176_v41, %v176_v41 }
 0x178   :  { %v23_v48 = vpop.xlane.xlu1 %22  ;;  %v194_v55 = vmul.f32 28.0, %v190_v50  ;;  %v193_v58 = vmul.f32 %v169_v34, %v169_v34 }
 0x179   :  { %v171_v39 = vsub.f32 %v155_v26, %v167_v36  ;;  %v178_v40 = vmul.f32 %v174_v37, %v174_v37  ;;  %v177_v45 = vadd.f32 %v173_v38, %v19_v12  ;;  %v191_v53 = vmul.f32 %v167_v36, %v167_v36 }
 0x17a   :  { %v21_v47 = vpop.xlane.xlu0 %20  ;;  %v29_v59 = vmul.f32 0.01, %v23_v48  ;;  %v197_v8 = vmul.f32 28.0, %v193_v58 }
 0x17b   :  { %182 = vadd.xlane.f32.xlu0 %v178_v40  ;;  %v175_v42 = vadd.f32 %v171_v39, %v17_v5  ;;  %v181_v46 = vmul.f32 %v177_v45, %v177_v45  ;;  %v28_v54 = vmul.f32 0.01, %v21_v47  ;;  %v195_v0 = vmul.f32 28.0, %v191_v53 }
 0x17c   :  { %v27_v52 = vpop.xlane.xlu1 %26  ;;  %v207_v6 = vmul.f32 %v29_v59, %v29_v59 }
 0x17d   :  { %v179_v44 = vmul.f32 %v175_v42, %v175_v42  ;;  %v206_v61 = vmul.f32 %v28_v54, %v28_v54  ;;  %v31_v7 = vmul.f32 0.01, %v27_v52 }
 0x17e   :  { %v25_v49 = vpop.xlane.xlu0 %24 }
 0x17f   :  { %186 = vadd.xlane.f32.xlu0 %v180_v43  ;;  %184 = vadd.xlane.f32.xlu1 %v179_v44  ;;  %v30_v62 = vmul.f32 0.01, %v25_v49  ;;  %v209_v17 = vmul.f32 %v31_v7, %v31_v7 }
 0x181   :  { %v208_v9 = vmul.f32 %v30_v62, %v30_v62 }
 0x183   :  { %188 = vadd.xlane.f32.xlu1 %v181_v46 }
 0x204   :  { %v183_v56 = vpop.xlane.xlu0 %182 }
 0x205   :  { %v198_v57 = vsub.f32 %v183_v56, %v194_v55 }
 0x207   :  { %v202_v63 = vmul.f32 0.01, %v198_v57 }
 0x208   :  { %v185_v1 = vpop.xlane.xlu1 %184  ;;  %v187_v2 = vpop.xlane.xlu0 %186 }
 0x209   :  { %v210_v3 = vsub.f32 %v202_v63, %v206_v61  ;;  %v199_v4 = vsub.f32 %v185_v1, %v195_v0  ;;  %v200_v5 = vsub.f32 %v187_v2, %v196_v60 }
 0x20b   :  { %v214_v10 = vadd.f32 1e-05, %v210_v3  ;;  %v203_v11 = vmul.f32 0.01, %v199_v4  ;;  %v204_v12 = vmul.f32 0.01, %v200_v5 }
 0x20c   :  { %v189_v13 = vpop.xlane.xlu1 %188 }
 0x20d   :  { %296 = vrsqrt.f32 %v214_v10  ;;  %v211_v14 = vsub.f32 %v203_v11, %v207_v6  ;;  %v212_v15 = vsub.f32 %v204_v12, %v208_v9  ;;  %v201_v16 = vsub.f32 %v189_v13, %v197_v8 }
 0x20f   :  { %v215_v18 = vadd.f32 1e-05, %v211_v14  ;;  %v216_v19 = vadd.f32 1e-05, %v212_v15  ;;  %v205_v20 = vmul.f32 0.01, %v201_v16 }
 0x211   :  { %298 = vrsqrt.f32 %v215_v18  ;;  %v213_v21 = vsub.f32 %v205_v20, %v209_v17 }
 0x212   :  { %300 = vrsqrt.f32 %v216_v19 }
 0x213   :  { %v217_v22 = vadd.f32 1e-05, %v213_v21 }
 0x215   :  { %302 = vrsqrt.f32 %v217_v22 }
 0x21a   :  { %v297_v23 = vpop.eup %296 }
 0x21b   :  { %v222_v24 = vmul.f32 %v297_v23, %v174_v37 }
 0x21d   :  { %226 = vst [vmem:[#allocation2] sm:$0xff] %v222_v24 }
 0x21e   :  { %v299_v25 = vpop.eup %298 }
 0x21f   :  { %v301_v26 = vpop.eup %300  ;;  %v223_v27 = vmul.f32 %v299_v25, %v175_v42 }
 0x220   :  { %v224_v28 = vmul.f32 %v301_v26, %v176_v41 }
 0x221   :  { %227 = vst [vmem:[#allocation2 + $0x8] sm:$0xff] %v223_v27 }
 0x222   :  { %v303_v29 = vpop.eup %302  ;;  %228 = vst [vmem:[#allocation2 + $0x10] sm:$0xff] %v224_v28 }
 0x223   :  { %v225_v30 = vmul.f32 %v303_v29, %v177_v45 }
 0x225   :  { %229 = vst [vmem:[#allocation2 + $0x18] sm:$0xff] %v225_v30 }
 0x226   :  { %315 = shalt.err (!%p312_p4)
}
 0x227   :  { %s327_s11 = smov 128   ;;  %s328_s12 = smov 8  }
 0x228   :  { %241 = dma.vmem_to_hbm [thread:$0]  %s236_s1, 512, %s394_s3, [#allocation3], %s327_s11, %s327_s11, %s328_s12  }
 0x229   :  { %324 = dma.done.wait [#allocation3], 512  }
 0x22a   :  { %325 = vsyncadd [#allocation3], 4294966784 }
 0x22b   :  { %245 = vsyncpa [#allocation3], 1 }

</bundles_post_ra>
